<compile_context>
chip_gen: v7x
topology: tpu7x:2x2x1
jax: 0.10.0
libtpu: 0.0.40
codegen_flags: <defaults>
</compile_context>

<pallas_src>
import jax
import jax.numpy as jnp
from jax import lax
from jax.experimental import pallas as pl
from jax.experimental.pallas import tpu as pltpu

EPS = 1e-5  # nn.BatchNorm2d default eps


def _round_up(x, m):
    return ((x + m - 1) // m) * m


def _vmem_limit_bytes():
    # Chip-aware scoped-VMEM budget (128 MiB physical on v5e/v6e, 64 MiB on v7x).
    try:
        cap = pltpu.get_tpu_info().vmem_capacity_bytes
    except Exception:
        cap = 64 * 1024 * 1024
    return int(min(cap * 3 // 4, 64 * 1024 * 1024))


def _make_conv_stats_kernel(taps, n_lanes):
    """Kernel 1: implicit-im2col conv + fused per-image BN partial statistics."""

    def kernel(x_ref, w_ref, mask_ref, y_ref, sum_ref, ssq_ref):
        # x_ref:    (1, n_phase, Cin, Lx_pad)  bf16  one padded image, spatial flat
        # w_ref:    (KH*KW, Cout_p, Cin)       bf16  per-tap transposed weights
        # mask_ref: (1, Lout_pad)              f32   1.0 on valid output pixels
        # y_ref:    (1, Cout_p, Lout_pad)      bf16  conv output (transposed layout)
        # sum_ref:  (1, Cout_p, 1)             f32   per-image sum   over valid pixels
        # ssq_ref:  (1, Cout_p, 1)             f32   per-image sumsq over valid pixels
        acc = None
        for p, (phase, start) in enumerate(taps):
            lhs = w_ref[p]                                     # (Cout_p, Cin)
            rhs = x_ref[0, phase, :, start:start + n_lanes]    # (Cin, Lout_pad)
            part = jnp.dot(lhs, rhs, preferred_element_type=jnp.float32)
            acc = part if acc is None else acc + part
        # Zero the wrapped-column / lane-padding positions so they drop out of the
        # statistics (and the stored padding of y is well defined).
        yf = acc * mask_ref[...]
        y_ref[0] = yf.astype(y_ref.dtype)
        sum_ref[0] = jnp.sum(yf, axis=-1, keepdims=True)
        # NOTE: E[x^2]-E[x]^2 in f32; fine at these sizes, but a compensated /
        # two-pass variance would be more robust for very large N*OH*OW.
        ssq_ref[0] = jnp.sum(yf * yf, axis=-1, keepdims=True)

    return kernel


def _make_bn_relu_kernel(n_images, cout, inv_count):
    """Kernel 2: reduce partial stats, normalize + affine + ReLU, drop channel pad."""

    def kernel(y_ref, sum_ref, ssq_ref, gamma_ref, beta_ref, o_ref):
        tot = sum_ref[0]
        tsq = ssq_ref[0]
        for n in range(1, n_images):       # tiny static unrolled reduce over batch
            tot = tot + sum_ref[n]
            tsq = tsq + ssq_ref[n]
        mean = tot * inv_count                                 # (Cout_p, 1)
        var = jnp.maximum(tsq * inv_count - mean * mean, 0.0)
        inv = lax.rsqrt(var + EPS)
        scale = gamma_ref[...] * inv
        shift = beta_ref[...] - mean * scale
        y = y_ref[0].astype(jnp.float32)                       # (Cout_p, Lout_pad)
        out = jnp.maximum(y * scale + shift, 0.0)
        # Padded channels (if any) have zero weights -> y == 0 and zero gamma/beta
        # -> scale == shift == 0; they are sliced off here regardless.
        o_ref[0] = out[:cout, :].astype(o_ref.dtype)

    return kernel


def basic_conv2d(x_nchw, weight_oihw, gamma, beta, *,
                 stride=1, padding=0, dilation=1):
    N, Cin, H, W = x_nchw.shape
    Cout, _, KH, KW = weight_oihw.shape
    s, d = stride, dilation

    OH = (H + 2 * padding - d * (KH - 1) - 1) // s + 1
    OW = (W + 2 * padding - d * (KW - 1) - 1) // s + 1

    # ---- host-side layout prep (all O(input size); no im2col blow-up) ----------
    xp = jnp.pad(x_nchw.astype(jnp.bfloat16),
                 ((0, 0), (0, 0), (padding, padding), (padding, padding)))
    Hp, Wp = H + 2 * padding, W + 2 * padding

    # stride > 1: space-to-batch phase split so every tap stays a contiguous lane
    # slice inside the kernel.  Total data volume is unchanged; s == 1 is just xp.
    U, V = -(-Hp // s), -(-Wp // s)
    phases = []
    for a in range(s):
        for b in range(s):
            ph = xp[:, :, a::s, b::s]
            ph = jnp.pad(ph, ((0, 0), (0, 0),
                              (0, U - ph.shape[2]), (0, V - ph.shape[3])))
            phases.append(ph)
    n_phase = s * s
    xph = jnp.stack(phases, axis=1)                      # (N, s*s, Cin, U, V)

    # Per-tap (kh, kw) -> (phase index, lane offset into the flattened phase).
    taps, max_start = [], 0
    for i in range(KH):
        for j in range(KW):
            _, qi = (i * d) % s, (i * d) // s
            _, qj = (j * d) % s, (j * d) // s
            start = qi * V + qj
            taps.append((((i * d) % s) * s + ((j * d) % s), start))
            max_start = max(max_start, start)

    Lout = OH * V                                        # flat rows incl. wrap columns
    Lout_pad = _round_up(Lout, 128)                      # lane-dense output width
    Lx_pad = _round_up(max(U * V, max_start + Lout_pad), 128)
    xflat = xph.reshape(N, n_phase, Cin, U * V)
    xflat = jnp.pad(xflat, ((0, 0), (0, 0), (0, 0), (0, Lx_pad - U * V)))

    # Transposed weights: one (Cout_p, Cin) matrix per tap.  Cout pads only to the
    # sublane multiple (8), never to 128.
    Cout_p = _round_up(Cout, 8)
    w_taps = jnp.transpose(weight_oihw, (2, 3, 0, 1)).reshape(KH * KW, Cout, Cin)
    w_taps = jnp.pad(w_taps, ((0, 0), (0, Cout_p - Cout), (0, 0))).astype(jnp.bfloat16)

    # 1.0 on valid output pixels (oh < OH, ow < OW) of the flattened (OH, V) rows.
    idx = jnp.arange(Lout_pad, dtype=jnp.int32)
    mask = ((idx < Lout) & ((idx % V) < OW)).astype(jnp.float32).reshape(1, Lout_pad)

    gamma_p = jnp.pad(gamma.astype(jnp.float32), (0, Cout_p - Cout)).reshape(Cout_p, 1)
    beta_p = jnp.pad(beta.astype(jnp.float32), (0, Cout_p - Cout)).reshape(Cout_p, 1)

    vmem_limit = _vmem_limit_bytes()
    step_bytes = (2 * n_phase * Cin * Lx_pad * 2      # x slab (double-buffered bf16)
                  + 2 * Cout_p * Lout_pad * 2         # y block (double-buffered bf16)
                  + Cout_p * Lout_pad * 4             # f32 accumulator
                  + KH * KW * Cout_p * Cin * 2)       # resident weights
    if step_bytes > vmem_limit:
        # TODO(synk): row-tile large feature maps with a manual halo DMA
        # (memory_space=pl.ANY + pltpu.make_async_copy) instead of whole images.
        raise NotImplementedError("per-image working set exceeds the VMEM budget")

    # ---- kernel 1: implicit-im2col conv + fused per-image BN statistics --------
    y, sums, ssqs = pl.pallas_call(
        _make_conv_stats_kernel(taps, Lout_pad),
        out_shape=(jax.ShapeDtypeStruct((N, Cout_p, Lout_pad), jnp.bfloat16),
                   jax.ShapeDtypeStruct((N, Cout_p, 1), jnp.float32),
                   jax.ShapeDtypeStruct((N, Cout_p, 1), jnp.float32)),
        grid_spec=pltpu.PrefetchScalarGridSpec(
            num_scalar_prefetch=0,
            grid=(N,),
            in_specs=[
                pl.BlockSpec((1, n_phase, Cin, Lx_pad), lambda n: (n, 0, 0, 0)),
                pl.BlockSpec((KH * KW, Cout_p, Cin), lambda n: (0, 0, 0)),
                pl.BlockSpec((1, Lout_pad), lambda n: (0, 0)),
            ],
            out_specs=[
                pl.BlockSpec((1, Cout_p, Lout_pad), lambda n: (n, 0, 0)),
                pl.BlockSpec((1, Cout_p, 1), lambda n: (n, 0, 0)),
                pl.BlockSpec((1, Cout_p, 1), lambda n: (n, 0, 0)),
            ]),
        compiler_params=pltpu.CompilerParams(
            dimension_semantics=("parallel",),
            vmem_limit_bytes=vmem_limit),
    )(xflat, w_taps, mask)

    # ---- kernel 2: finalize stats in-kernel, normalize + affine + ReLU ---------
    inv_count = 1.0 / float(N * OH * OW)
    out_flat = pl.pallas_call(
        _make_bn_relu_kernel(N, Cout, inv_count),
        out_shape=jax.ShapeDtypeStruct((N, Cout, Lout_pad), x_nchw.dtype),
        grid_spec=pltpu.PrefetchScalarGridSpec(
            num_scalar_prefetch=0,
            grid=(N,),
            in_specs=[
                pl.BlockSpec((1, Cout_p, Lout_pad), lambda n: (n, 0, 0)),
                pl.BlockSpec((N, Cout_p, 1), lambda n: (0, 0, 0)),
                pl.BlockSpec((N, Cout_p, 1), lambda n: (0, 0, 0)),
                pl.BlockSpec((Cout_p, 1), lambda n: (0, 0)),
                pl.BlockSpec((Cout_p, 1), lambda n: (0, 0)),
            ],
            out_specs=pl.BlockSpec((1, Cout, Lout_pad), lambda n: (n, 0, 0))),
        compiler_params=pltpu.CompilerParams(
            dimension_semantics=("parallel",),
            vmem_limit_bytes=vmem_limit),
    )(y, sums, ssqs, gamma_p, beta_p)

    # Output is already in flattened NCHW; the only tail work is a cheap width crop.
    out = out_flat[:, :, :Lout].reshape(N, Cout, OH, V)[:, :, :, :OW]
    return out


def _reference(x, w, gamma, beta, stride, padding, dilation):
    # Full-precision f32 reference of the PyTorch module's forward pass.
    y = lax.conv_general_dilated(
        x, w, window_strides=(stride, stride),
        padding=((padding, padding), (padding, padding)),
        rhs_dilation=(dilation, dilation),
        dimension_numbers=("NCHW", "OIHW", "NCHW"),
        precision=lax.Precision.HIGHEST)
    mean = jnp.mean(y, axis=(0, 2, 3), keepdims=True)
    var = jnp.mean((y - mean) ** 2, axis=(0, 2, 3), keepdims=True)
    yn = (y - mean) / jnp.sqrt(var + EPS)
    yn = yn * gamma.reshape(1, -1, 1, 1) + beta.reshape(1, -1, 1, 1)
    return jnp.maximum(yn, 0.0)


if __name__ == "__main__":
    # BasicConv2d(in_planes=4, out_planes=8, kernel_size=3, stride=1, padding=1)
    N, Cin, H, W = 2, 4, 16, 16
    Cout, KH, KW = 8, 3, 3
    stride, padding, dilation = 1, 1, 1

    key = jax.random.PRNGKey(0)
    kx, kw, kg, kb = jax.random.split(key, 4)
    x = jax.random.normal(kx, (N, Cin, H, W), dtype=jnp.float32)
    weight = jax.random.normal(kw, (Cout, Cin, KH, KW), dtype=jnp.float32) * 0.1
    gamma = 1.0 + 0.1 * jax.random.normal(kg, (Cout,), dtype=jnp.float32)
    beta = 0.1 * jax.random.normal(kb, (Cout,), dtype=jnp.float32)

    out = basic_conv2d(x, weight, gamma, beta,
                       stride=stride, padding=padding, dilation=dilation)
    out = jax.block_until_ready(out)

    ref = _reference(x, weight, gamma, beta, stride, padding, dilation)
    ref = jax.block_until_ready(ref)

    assert out.shape == (N, Cout, H, W), out.shape
    # bf16 MXU operands + bf16 y intermediate vs a full-f32 reference -> looser
    # tolerance than pure f32, but tight enough to catch real bugs.
    assert jnp.allclose(out, ref, atol=5e-2, rtol=5e-2), (
        float(jnp.max(jnp.abs(out - ref))))
    print("KERNEL_OK")
</pallas_src>

<mosaic_0001>
module attributes {stable_mosaic.version = 11 : i64} {
  func.func @kernel(%arg0: i32, %arg1: memref<1x1x4x512xbf16, #tpu.memory_space<vmem>>, %arg2: memref<9x8x4xbf16, #tpu.memory_space<vmem>>, %arg3: memref<1x384xf32, #tpu.memory_space<vmem>>, %arg4: memref<1x8x384xbf16, #tpu.memory_space<vmem>>, %arg5: memref<1x8x1xf32, #tpu.memory_space<vmem>>, %arg6: memref<1x8x1xf32, #tpu.memory_space<vmem>>) attributes {dimension_semantics = [#tpu.dimension_semantics<parallel>], iteration_bounds = array<i64: 2>, scalar_prefetch = 0 : i64, scratch_operands = 0 : i64, tpu.core_type = #tpu.core_type<tc>, window_params = [{transform_indices = @transform_0, window_bounds = array<i64: 1, 1, 4, 512>}, {pipeline_mode = #tpu.pipeline_mode<synchronous>, transform_indices = @transform_1, window_bounds = array<i64: 9, 8, 4>}, {pipeline_mode = #tpu.pipeline_mode<synchronous>, transform_indices = @transform_2, window_bounds = array<i64: 1, 384>}, {transform_indices = @transform_3, window_bounds = array<i64: 1, 8, 384>}, {transform_indices = @transform_4, window_bounds = array<i64: 1, 8, 1>}, {transform_indices = @transform_5, window_bounds = array<i64: 1, 8, 1>}]} {
    %c0 = arith.constant 0 : index
    %c0_0 = arith.constant 0 : index
    %c0_1 = arith.constant 0 : index
    %0 = vector.load %arg2[%c0, %c0_0, %c0_1] : memref<9x8x4xbf16, #tpu.memory_space<vmem>>, vector<1x8x4xbf16>
    %1 = vector.shape_cast %0 : vector<1x8x4xbf16> to vector<8x4xbf16>
    %c0_2 = arith.constant 0 : index
    %c0_3 = arith.constant 0 : index
    %c0_4 = arith.constant 0 : index
    %c0_5 = arith.constant 0 : index
    %2 = vector.load %arg1[%c0_2, %c0_3, %c0_4, %c0_5] : memref<1x1x4x512xbf16, #tpu.memory_space<vmem>>, vector<1x1x4x384xbf16>
    %3 = vector.shape_cast %2 : vector<1x1x4x384xbf16> to vector<4x384xbf16>
    %cst = arith.constant dense<0.000000e+00> : vector<8x384xf32>
    %4 = tpu.matmul %1, %3, %cst {dimension_numbers = #tpu.dot_dimension_numbers<[1], [0], [0], [1], [0, 0, 1, 1], [], []>} : vector<8x4xbf16>, vector<4x384xbf16>, vector<8x384xf32> -> vector<8x384xf32>
    %c1 = arith.constant 1 : index
    %c0_6 = arith.constant 0 : index
    %c0_7 = arith.constant 0 : index
    %5 = vector.load %arg2[%c1, %c0_6, %c0_7] : memref<9x8x4xbf16, #tpu.memory_space<vmem>>, vector<1x8x4xbf16>
    %6 = vector.shape_cast %5 : vector<1x8x4xbf16> to vector<8x4xbf16>
    %c0_8 = arith.constant 0 : index
    %c0_9 = arith.constant 0 : index
    %c0_10 = arith.constant 0 : index
    %c1_11 = arith.constant 1 : index
    %7 = vector.load %arg1[%c0_8, %c0_9, %c0_10, %c1_11] : memref<1x1x4x512xbf16, #tpu.memory_space<vmem>>, vector<1x1x4x384xbf16>
    %8 = vector.shape_cast %7 : vector<1x1x4x384xbf16> to vector<4x384xbf16>
    %cst_12 = arith.constant dense<0.000000e+00> : vector<8x384xf32>
    %9 = tpu.matmul %6, %8, %cst_12 {dimension_numbers = #tpu.dot_dimension_numbers<[1], [0], [0], [1], [0, 0, 1, 1], [], []>} : vector<8x4xbf16>, vector<4x384xbf16>, vector<8x384xf32> -> vector<8x384xf32>
    %10 = arith.addf %4, %9 : vector<8x384xf32>
    %c2 = arith.constant 2 : index
    %c0_13 = arith.constant 0 : index
    %c0_14 = arith.constant 0 : index
    %11 = vector.load %arg2[%c2, %c0_13, %c0_14] : memref<9x8x4xbf16, #tpu.memory_space<vmem>>, vector<1x8x4xbf16>
    %12 = vector.shape_cast %11 : vector<1x8x4xbf16> to vector<8x4xbf16>
    %c0_15 = arith.constant 0 : index
    %c0_16 = arith.constant 0 : index
    %c0_17 = arith.constant 0 : index
    %c2_18 = arith.constant 2 : index
    %13 = vector.load %arg1[%c0_15, %c0_16, %c0_17, %c2_18] : memref<1x1x4x512xbf16, #tpu.memory_space<vmem>>, vector<1x1x4x384xbf16>
    %14 = vector.shape_cast %13 : vector<1x1x4x384xbf16> to vector<4x384xbf16>
    %cst_19 = arith.constant dense<0.000000e+00> : vector<8x384xf32>
    %15 = tpu.matmul %12, %14, %cst_19 {dimension_numbers = #tpu.dot_dimension_numbers<[1], [0], [0], [1], [0, 0, 1, 1], [], []>} : vector<8x4xbf16>, vector<4x384xbf16>, vector<8x384xf32> -> vector<8x384xf32>
    %16 = arith.addf %10, %15 : vector<8x384xf32>
    %c3 = arith.constant 3 : index
    %c0_20 = arith.constant 0 : index
    %c0_21 = arith.constant 0 : index
    %17 = vector.load %arg2[%c3, %c0_20, %c0_21] : memref<9x8x4xbf16, #tpu.memory_space<vmem>>, vector<1x8x4xbf16>
    %18 = vector.shape_cast %17 : vector<1x8x4xbf16> to vector<8x4xbf16>
    %c0_22 = arith.constant 0 : index
    %c0_23 = arith.constant 0 : index
    %c0_24 = arith.constant 0 : index
    %c18 = arith.constant 18 : index
    %19 = vector.load %arg1[%c0_22, %c0_23, %c0_24, %c18] : memref<1x1x4x512xbf16, #tpu.memory_space<vmem>>, vector<1x1x4x384xbf16>
    %20 = vector.shape_cast %19 : vector<1x1x4x384xbf16> to vector<4x384xbf16>
    %cst_25 = arith.constant dense<0.000000e+00> : vector<8x384xf32>
    %21 = tpu.matmul %18, %20, %cst_25 {dimension_numbers = #tpu.dot_dimension_numbers<[1], [0], [0], [1], [0, 0, 1, 1], [], []>} : vector<8x4xbf16>, vector<4x384xbf16>, vector<8x384xf32> -> vector<8x384xf32>
    %22 = arith.addf %16, %21 : vector<8x384xf32>
    %c4 = arith.constant 4 : index
    %c0_26 = arith.constant 0 : index
    %c0_27 = arith.constant 0 : index
    %23 = vector.load %arg2[%c4, %c0_26, %c0_27] : memref<9x8x4xbf16, #tpu.memory_space<vmem>>, vector<1x8x4xbf16>
    %24 = vector.shape_cast %23 : vector<1x8x4xbf16> to vector<8x4xbf16>
    %c0_28 = arith.constant 0 : index
    %c0_29 = arith.constant 0 : index
    %c0_30 = arith.constant 0 : index
    %c19 = arith.constant 19 : index
    %25 = vector.load %arg1[%c0_28, %c0_29, %c0_30, %c19] : memref<1x1x4x512xbf16, #tpu.memory_space<vmem>>, vector<1x1x4x384xbf16>
    %26 = vector.shape_cast %25 : vector<1x1x4x384xbf16> to vector<4x384xbf16>
    %cst_31 = arith.constant dense<0.000000e+00> : vector<8x384xf32>
    %27 = tpu.matmul %24, %26, %cst_31 {dimension_numbers = #tpu.dot_dimension_numbers<[1], [0], [0], [1], [0, 0, 1, 1], [], []>} : vector<8x4xbf16>, vector<4x384xbf16>, vector<8x384xf32> -> vector<8x384xf32>
    %28 = arith.addf %22, %27 : vector<8x384xf32>
    %c5 = arith.constant 5 : index
    %c0_32 = arith.constant 0 : index
    %c0_33 = arith.constant 0 : index
    %29 = vector.load %arg2[%c5, %c0_32, %c0_33] : memref<9x8x4xbf16, #tpu.memory_space<vmem>>, vector<1x8x4xbf16>
    %30 = vector.shape_cast %29 : vector<1x8x4xbf16> to vector<8x4xbf16>
    %c0_34 = arith.constant 0 : index
    %c0_35 = arith.constant 0 : index
    %c0_36 = arith.constant 0 : index
    %c20 = arith.constant 20 : index
    %31 = vector.load %arg1[%c0_34, %c0_35, %c0_36, %c20] : memref<1x1x4x512xbf16, #tpu.memory_space<vmem>>, vector<1x1x4x384xbf16>
    %32 = vector.shape_cast %31 : vector<1x1x4x384xbf16> to vector<4x384xbf16>
    %cst_37 = arith.constant dense<0.000000e+00> : vector<8x384xf32>
    %33 = tpu.matmul %30, %32, %cst_37 {dimension_numbers = #tpu.dot_dimension_numbers<[1], [0], [0], [1], [0, 0, 1, 1], [], []>} : vector<8x4xbf16>, vector<4x384xbf16>, vector<8x384xf32> -> vector<8x384xf32>
    %34 = arith.addf %28, %33 : vector<8x384xf32>
    %c6 = arith.constant 6 : index
    %c0_38 = arith.constant 0 : index
    %c0_39 = arith.constant 0 : index
    %35 = vector.load %arg2[%c6, %c0_38, %c0_39] : memref<9x8x4xbf16, #tpu.memory_space<vmem>>, vector<1x8x4xbf16>
    %36 = vector.shape_cast %35 : vector<1x8x4xbf16> to vector<8x4xbf16>
    %c0_40 = arith.constant 0 : index
    %c0_41 = arith.constant 0 : index
    %c0_42 = arith.constant 0 : index
    %c36 = arith.constant 36 : index
    %37 = vector.load %arg1[%c0_40, %c0_41, %c0_42, %c36] : memref<1x1x4x512xbf16, #tpu.memory_space<vmem>>, vector<1x1x4x384xbf16>
    %38 = vector.shape_cast %37 : vector<1x1x4x384xbf16> to vector<4x384xbf16>
    %cst_43 = arith.constant dense<0.000000e+00> : vector<8x384xf32>
    %39 = tpu.matmul %36, %38, %cst_43 {dimension_numbers = #tpu.dot_dimension_numbers<[1], [0], [0], [1], [0, 0, 1, 1], [], []>} : vector<8x4xbf16>, vector<4x384xbf16>, vector<8x384xf32> -> vector<8x384xf32>
    %40 = arith.addf %34, %39 : vector<8x384xf32>
    %c7 = arith.constant 7 : index
    %c0_44 = arith.constant 0 : index
    %c0_45 = arith.constant 0 : index
    %41 = vector.load %arg2[%c7, %c0_44, %c0_45] : memref<9x8x4xbf16, #tpu.memory_space<vmem>>, vector<1x8x4xbf16>
    %42 = vector.shape_cast %41 : vector<1x8x4xbf16> to vector<8x4xbf16>
    %c0_46 = arith.constant 0 : index
    %c0_47 = arith.constant 0 : index
    %c0_48 = arith.constant 0 : index
    %c37 = arith.constant 37 : index
    %43 = vector.load %arg1[%c0_46, %c0_47, %c0_48, %c37] : memref<1x1x4x512xbf16, #tpu.memory_space<vmem>>, vector<1x1x4x384xbf16>
    %44 = vector.shape_cast %43 : vector<1x1x4x384xbf16> to vector<4x384xbf16>
    %cst_49 = arith.constant dense<0.000000e+00> : vector<8x384xf32>
    %45 = tpu.matmul %42, %44, %cst_49 {dimension_numbers = #tpu.dot_dimension_numbers<[1], [0], [0], [1], [0, 0, 1, 1], [], []>} : vector<8x4xbf16>, vector<4x384xbf16>, vector<8x384xf32> -> vector<8x384xf32>
    %46 = arith.addf %40, %45 : vector<8x384xf32>
    %c8 = arith.constant 8 : index
    %c0_50 = arith.constant 0 : index
    %c0_51 = arith.constant 0 : index
    %47 = vector.load %arg2[%c8, %c0_50, %c0_51] : memref<9x8x4xbf16, #tpu.memory_space<vmem>>, vector<1x8x4xbf16>
    %48 = vector.shape_cast %47 : vector<1x8x4xbf16> to vector<8x4xbf16>
    %c0_52 = arith.constant 0 : index
    %c0_53 = arith.constant 0 : index
    %c0_54 = arith.constant 0 : index
    %c38 = arith.constant 38 : index
    %49 = vector.load %arg1[%c0_52, %c0_53, %c0_54, %c38] : memref<1x1x4x512xbf16, #tpu.memory_space<vmem>>, vector<1x1x4x384xbf16>
    %50 = vector.shape_cast %49 : vector<1x1x4x384xbf16> to vector<4x384xbf16>
    %cst_55 = arith.constant dense<0.000000e+00> : vector<8x384xf32>
    %51 = tpu.matmul %48, %50, %cst_55 {dimension_numbers = #tpu.dot_dimension_numbers<[1], [0], [0], [1], [0, 0, 1, 1], [], []>} : vector<8x4xbf16>, vector<4x384xbf16>, vector<8x384xf32> -> vector<8x384xf32>
    %52 = arith.addf %46, %51 : vector<8x384xf32>
    %c0_56 = arith.constant 0 : index
    %c0_57 = arith.constant 0 : index
    %53 = vector.load %arg3[%c0_56, %c0_57] : memref<1x384xf32, #tpu.memory_space<vmem>>, vector<1x384xf32>
    %54 = vector.broadcast %53 : vector<1x384xf32> to vector<8x384xf32>
    %55 = arith.mulf %52, %54 : vector<8x384xf32>
    %56 = arith.truncf %55 : vector<8x384xf32> to vector<8x384xbf16>
    %c0_58 = arith.constant 0 : index
    %c0_59 = arith.constant 0 : index
    %c0_60 = arith.constant 0 : index
    %57 = vector.load %arg4[%c0_58, %c0_59, %c0_60] : memref<1x8x384xbf16, #tpu.memory_space<vmem>>, vector<1x8x384xbf16>
    %58 = vector.shape_cast %57 : vector<1x8x384xbf16> to vector<8x384xbf16>
    %59 = vector.shape_cast %56 : vector<8x384xbf16> to vector<1x8x384xbf16>
    tpu.vector_store %arg4[%c0_58, %c0_59, %c0_60], %59 {strides = array<i32>} : memref<1x8x384xbf16, #tpu.memory_space<vmem>>, vector<1x8x384xbf16>,
    %cst_61 = arith.constant dense<0.000000e+00> : vector<8xf32>
    %60 = vector.multi_reduction <add>, %55, %cst_61 [1] : vector<8x384xf32> to vector<8xf32>
    %61 = vector.shape_cast %60 : vector<8xf32> to vector<8x1xf32>
    %c0_62 = arith.constant 0 : index
    %c0_63 = arith.constant 0 : index
    %c0_64 = arith.constant 0 : index
    %62 = vector.load %arg5[%c0_62, %c0_63, %c0_64] : memref<1x8x1xf32, #tpu.memory_space<vmem>>, vector<1x8x1xf32>
    %63 = vector.shape_cast %62 : vector<1x8x1xf32> to vector<8x1xf32>
    %64 = vector.shape_cast %61 : vector<8x1xf32> to vector<1x8x1xf32>
    tpu.vector_store %arg5[%c0_62, %c0_63, %c0_64], %64 {strides = array<i32>} : memref<1x8x1xf32, #tpu.memory_space<vmem>>, vector<1x8x1xf32>,
    %65 = arith.mulf %55, %55 : vector<8x384xf32>
    %cst_65 = arith.constant dense<0.000000e+00> : vector<8xf32>
    %66 = vector.multi_reduction <add>, %65, %cst_65 [1] : vector<8x384xf32> to vector<8xf32>
    %67 = vector.shape_cast %66 : vector<8xf32> to vector<8x1xf32>
    %c0_66 = arith.constant 0 : index
    %c0_67 = arith.constant 0 : index
    %c0_68 = arith.constant 0 : index
    %68 = vector.load %arg6[%c0_66, %c0_67, %c0_68] : memref<1x8x1xf32, #tpu.memory_space<vmem>>, vector<1x8x1xf32>
    %69 = vector.shape_cast %68 : vector<1x8x1xf32> to vector<8x1xf32>
    %70 = vector.shape_cast %67 : vector<8x1xf32> to vector<1x8x1xf32>
    tpu.vector_store %arg6[%c0_66, %c0_67, %c0_68], %70 {strides = array<i32>} : memref<1x8x1xf32, #tpu.memory_space<vmem>>, vector<1x8x1xf32>,
    return
  }
  func.func @transform_0(%arg0: i32) -> (i32, i32, i32, i32) {
    %c0_i32 = arith.constant 0 : i32
    %c0_i32_0 = arith.constant 0 : i32
    %c0_i32_1 = arith.constant 0 : i32
    %c0_i32_2 = arith.constant 0 : i32
    return %arg0, %c0_i32, %c0_i32_0, %c0_i32_1 : i32, i32, i32, i32
  }
  func.func @transform_1(%arg0: i32) -> (i32, i32, i32) {
    %c0_i32 = arith.constant 0 : i32
    %c0_i32_0 = arith.constant 0 : i32
    %c0_i32_1 = arith.constant 0 : i32
    %c0_i32_2 = arith.constant 0 : i32
    return %c0_i32, %c0_i32_0, %c0_i32_1 : i32, i32, i32
  }
  func.func @transform_2(%arg0: i32) -> (i32, i32) {
    %c0_i32 = arith.constant 0 : i32
    %c0_i32_0 = arith.constant 0 : i32
    %c0_i32_1 = arith.constant 0 : i32
    return %c0_i32, %c0_i32_0 : i32, i32
  }
  func.func @transform_3(%arg0: i32) -> (i32, i32, i32) {
    %c0_i32 = arith.constant 0 : i32
    %c0_i32_0 = arith.constant 0 : i32
    %c0_i32_1 = arith.constant 0 : i32
    return %arg0, %c0_i32, %c0_i32_0 : i32, i32, i32
  }
  func.func @transform_4(%arg0: i32) -> (i32, i32, i32) {
    %c0_i32 = arith.constant 0 : i32
    %c0_i32_0 = arith.constant 0 : i32
    %c0_i32_1 = arith.constant 0 : i32
    return %arg0, %c0_i32, %c0_i32_0 : i32, i32, i32
  }
  func.func @transform_5(%arg0: i32) -> (i32, i32, i32) {
    %c0_i32 = arith.constant 0 : i32
    %c0_i32_0 = arith.constant 0 : i32
    %c0_i32_1 = arith.constant 0 : i32
    return %arg0, %c0_i32, %c0_i32_0 : i32, i32, i32
  }
}

</mosaic_0001>

<bundles_post_ra>
// kernel: tpu_custom_call.1
= control target key start
LH: loop header
LB: loop body
LE: loop exit
PB: predicated region body
PF: predicated region fallthrough
CT: control target
= control target key end

     0   :  { %11 = vsyncpa [#allocation3], 0  ;;  %s2174_s0 = inlined_call_operand.vmem [shape: bf16[2,1,4,512], index: 0, kind: input, shape index: {}]   ;;  %s2175_s1 = inlined_call_operand.vmem [shape: bf16[9,8,4], index: 1, kind: input, shape index: {}]   ;;  %s2176_s2 = inlined_call_operand.vmem [shape: f32[1,384], index: 2, kind: input, shape index: {}]   ;;  %s2177_s3 = inlined_call_operand.hbm [shape: bf16[2,8,384], index: 3, kind: output, shape index: {0}]   ;;  %s2178_s4 = inlined_call_operand.vmem [shape: f32[2,8,1], index: 4, kind: output, shape index: {1}]   ;;  %s2179_s5 = inlined_call_operand.vmem [shape: f32[2,8,1], index: 5, kind: output, shape index: {2}]  }
   0x1   :  { %13 = vsyncpa [#allocation3 + $0x1], 0  ;;  %s1922_s18 = smov 0   ;;  %s1924_s19 = smov 0  }
   0x2   :  { %s1926_s20 = smov 0   ;;  %s1928_s21 = smov 0  }
   0x3 LB: > { %s1943_s22 = sadd.s32 4294967295, %s1877_s21   ;;  %s1573_s23 = sadd.s32 4294967294, %s1877_s21   ;;  %s1877_s21 = sphi %s1928_s21, %s2185_s21   ;;  %s1873_s20 = sphi %s1926_s20, %s2184_s20   ;;  %s1869_s19 = sphi %s1924_s19, %s2183_s19   ;;  %s1865_s18 = sphi %s1922_s18, %s2182_s18  }
   0x4   : > { %s1947_s24 = sadd.s32 1, %s1877_s21   ;;  %s94_s25 = sadd.s32 1, %s1873_s20 }
   0x5   : > { %s91_s26 = ssub.s32 %s1877_s21, %s1947_s24  ;;  %p104_p0 = scmp.ne.s32.totalorder %s1873_s20, %s1869_s19 }
   0x6   : > { %p92_p1 = scmp.eq.s32.totalorder %s91_s26, 0  ;;  %p105_p2 = scmp.eq.s32.totalorder %s1943_s22, 1 }
   0x7   : > { %p110_p3 = scmp.ne.s32.totalorder %s1869_s19, %s1865_s18  ;;  %p111_p4 = scmp.eq.s32.totalorder %s1573_s23, 1 }
   0x8   : > { %s1958_s27 = scalar_select %p92_p1, %s1873_s20, %s94_s25  }
   0x9   : > { %p1960_p5 = por %p105_p2, %p104_p0  ;;  %p1964_p6 = por %p111_p4, %p110_p3 }
   0xa   : > { %p1576_p7 = scmp.ge.s32.totalorder %s1877_s21, 1  ;;  %p195_p8 = scmp.lt.s32.totalorder %s1877_s21, 3 }
   0xc   : > { %p196_p9 = pnand %p1576_p7, %p195_p8 }
   0xd   : > { %p231_p10 = scmp.lt.s32.totalorder (!%p196_p9), %s1943_s22, 1  ;;  %v255_v0 = vlaneseq (!%p196_p9)  ;;  %v1879_v1 = vmov (!%p196_p9), 1983009808   ;;  %v1880_v5 = vmov (!%p196_p9), 0.0   ;;  %v1881_v6 = vmov (!%p196_p9), 0   ;;  %s1883_s10 = smov (!%p196_p9), 127  }
   0xe   : > { %199 = sbr.rel (%p196_p9) target bundleno = 612 (0x264), region = 32  ;;  %v253_v2 = vunpack.c.l.s4 (!%p196_p9), %v1879_v1  ;;  %1642 = vmatprep.subr.bf16.mxu1 (!%p196_p9), %v1880_v5  ;;  %326 = vmatprep.mubr.bf16.mxu0 (!%p196_p9), %v1881_v6  ;;  %vm1882_vm0 = vmmov (!%p196_p9), 0   ;;  %s1884_s11 = smov (!%p196_p9), 126   ;;  %vm276_vm1 = vcmask (!%p196_p9), 1039360   ;;  %vm284_vm2 = vcmask (!%p196_p9), 1041408  }
   0xf   : > { %v1972_v3 = vshrl.u32 (!%p196_p9), %v255_v0, 7  ;;  %1644 = vmatprep.mubr.msk.bf16.mxu1 (!%p196_p9), %vm1882_vm0, %v1880_v5  ;;  %s1885_s12 = smov (!%p196_p9), 110   ;;  %s1886_s13 = smov (!%p196_p9), 109   ;;  %v1581_v27 = vld [vmem:[%s2175_s1 + $0x4] sm:$0xf] (!%p196_p9)  ;;  %vm280_vm3 = vcmask (!%p196_p9), 31744  }
  0x10   : > { %v254_v4 = vunpack.c.0.s8 (!%p196_p9), %v253_v2  ;;  %s1887_s14 = smov (!%p196_p9), 108   ;;  %s1888_s15 = smov (!%p196_p9), 92   ;;  %vm514_vm4 = vcmask (!%p196_p9), 1031168   ;;  %vm643_vm5 = vcmask (!%p196_p9), 900096   ;;  %v245_v40 = vld [vmem:[%s2175_s1] sm:$0xf] (!%p196_p9) }
  0x11   : > { %s1889_s16 = smov (!%p196_p9), 91   ;;  %s1890_s17 = smov (!%p196_p9), 90   ;;  %vm772_vm6 = vcmask (!%p196_p9), 891904   ;;  %v1588_v51 = vld [vmem:[%s2175_s1 + $0x8] sm:$0xf] (!%p196_p9)  ;;  %vm901_vm7 = vcmask (!%p196_p9), 883712  }
  0x12   : > { %v257_v7 = vsub.s32 (!%p196_p9), %v254_v4, %v1972_v3  ;;  %v1592_v61 = vld [vmem:[%s2175_s1 + $0xc] sm:$0xf] (!%p196_p9)  ;;  %vm1030_vm8 = vcmask (!%p196_p9), 752640   ;;  %vm1159_vm9 = vcmask (!%p196_p9), 744448   ;;  %vm1288_vm10 = vcmask (!%p196_p9), 736256   ;;  %s216_s8 = sand.u32 (!%p196_p9), 1, %s1869_s19  }
  0x13   : > { %s1891_s23 = smov (!%p196_p9), [#allocation2]  }
  0x14   : > { %s1819_s25 = sshll.u32 (!%p196_p9), %s1891_s23, 4  ;;  %s1820_s25 = int_to_ptr.vmem [resolvable:$false] %s1819_s25 }
  0x15   : > { %s232_s30 = scalar_select %p231_p10, %s1943_s22, 1 }
  0x16   : > { %s1821_s26 = scalar_lea.vmem %s1820_s25, 384 }
  0x17   : > { %s1976_s6 = sshll.u32 %s232_s30, 3 }
  0x18   : > { %s235_s9 = scalar_lea.vmem %s2174_s0, %s1976_s6 }
  0x19   : > { %v249_v8 = vld [vmem:[%s235_s9] sm:$0xff] }
  0x1a   : > { %v246_v9 = vld [vmem:[%s235_s9] sm:$0x3f]  ;;  %v258_v10 = vrot.slane %v249_v8, %v257_v7  ;;  %v251_v11 = vcombine.high %v249_v8, %v249_v8  ;;  %s1760_s9 = smul.u32 12, %s216_s8 }
  0x1b   : > { %v1985_v12 = vrot.slane %v246_v9, %v257_v7  ;;  %v376_v13 = vcombine.high %v246_v9, %v246_v9 }
  0x1c   : > { %268 = vrot.lane.b32.xlu0 %v258_v10, %s1883_s10  ;;  %v266_v14 = vcombine.high %v258_v10, %v258_v10  ;;  %v265_v15 = vrot.slane %v251_v11, %v257_v7 }
  0x1d   : > { %v390_v16 = vrot.slane %v376_v13, %v257_v7  ;;  %v391_v21 = vcombine.high %v1985_v12, %v1985_v12  ;;  %v396_v29 = vsel %vm284_vm2, %v1985_v12, 0 }
  0x1e   : > { %272 = vrot.lane.b32.xlu1 %v265_v15, %s1883_s10  ;;  %v267_v17 = vcombine.high %v265_v15, %v265_v15 }
  0x1f   : > { %v402_v31 = vsel %vm284_vm2, %v390_v16, 0 }
  0x20   : > { %270 = vrot.lane.b32.xlu0 %v266_v14, %s1883_s10 }
  0x22   : > { %274 = vrot.lane.b32.xlu1 %v267_v17, %s1883_s10  ;;  %s218_s10 = scalar_lea.vmem [#allocation2], %s1760_s9 }
  0x24   : > { %506 = vrot.lane.b32.xlu0 %v258_v10, %s1884_s11 }
  0x26   : > { %508 = vrot.lane.b32.xlu1 %v266_v14, %s1884_s11 }
  0x28   : > { %510 = vrot.lane.b32.xlu0 %v265_v15, %s1884_s11 }
  0x2a   : > { %512 = vrot.lane.b32.xlu1 %v267_v17, %s1884_s11  ;;  %s1761_s11 = smul.u32 192, %s1943_s22 }
  0x2c   : > { %635 = vrot.lane.b32.xlu0 %v258_v10, %s1885_s12 }
  0x2e   : > { %637 = vrot.lane.b32.xlu1 %v266_v14, %s1885_s12 }
  0x30   : > { %639 = vrot.lane.b32.xlu0 %v265_v15, %s1885_s12 }
  0x32   : > { %641 = vrot.lane.b32.xlu1 %v267_v17, %s1885_s12  ;;  %s1460_s12 = sshll.u32 %s218_s10, 4  ;;  %s1461_s12 = int_to_ptr.vmem [resolvable:$true] %s1460_s12 }
  0x33   : > { %p1822_p0 = scmp.lt.s32.totalorder %s1461_s12, %s1820_s25 }
  0x34   : > { %764 = vrot.lane.b32.xlu0 %v258_v10, %s1886_s13 }
  0x36   : > { %766 = vrot.lane.b32.xlu1 %v266_v14, %s1886_s13 }
  0x38   : > { %768 = vrot.lane.b32.xlu0 %v265_v15, %s1886_s13 }
  0x3a   : > { %770 = vrot.lane.b32.xlu1 %v267_v17, %s1886_s13 }
  0x3c   : > { %893 = vrot.lane.b32.xlu0 %v258_v10, %s1887_s14 }
  0x3e   : > { %895 = vrot.lane.b32.xlu1 %v266_v14, %s1887_s14 }
  0x40   : > { %897 = vrot.lane.b32.xlu0 %v265_v15, %s1887_s14 }
  0x42   : > { %899 = vrot.lane.b32.xlu1 %v267_v17, %s1887_s14 }
  0x44   : > { %1022 = vrot.lane.b32.xlu0 %v258_v10, %s1888_s15 }
  0x46   : > { %1024 = vrot.lane.b32.xlu1 %v266_v14, %s1888_s15 }
  0x48   : > { %1026 = vrot.lane.b32.xlu0 %v265_v15, %s1888_s15 }
  0x4a   : > { %1028 = vrot.lane.b32.xlu1 %v267_v17, %s1888_s15  ;;  %s2128_s15 = scalar_lea.hbm %s2177_s3, %s1761_s11 }
  0x4c   : > { %1151 = vrot.lane.b32.xlu0 %v258_v10, %s1889_s16 }
  0x4e   : > { %1153 = vrot.lane.b32.xlu1 %v266_v14, %s1889_s16 }
  0x50   : > { %1155 = vrot.lane.b32.xlu0 %v265_v15, %s1889_s16 }
  0x52   : > { %1157 = vrot.lane.b32.xlu1 %v267_v17, %s1889_s16  ;;  %s1438_s16 = scalar_lea.sflag [#allocation3], %s216_s8 }
  0x54   : > { %1280 = vrot.lane.b32.xlu0 %v258_v10, %s1890_s17  ;;  %v1596_v10 = vld [vmem:[%s2175_s1 + $0x10] sm:$0xf] }
  0x56   : > { %1282 = vrot.lane.b32.xlu1 %v266_v14, %s1890_s17 }
  0x58   : > { %1284 = vrot.lane.b32.xlu0 %v265_v15, %s1890_s17 }
  0x5a   : > { %1286 = vrot.lane.b32.xlu1 %v267_v17, %s1890_s17  ;;  %s1815_s17 = scalar_lea.vmem %s1461_s12, 192 }
  0x5b   : > { %p1816_p11 = scmp.ne.s32.totalorder %s1461_s12, %s1815_s17  ;;  %p1823_p1 = scmp.lt.s32.totalorder %s1821_s26, %s1815_s17 }
  0x5d   : > { %p1817_p12 = pnand %p1816_p11, %p1960_p5  ;;  %p1824_p2 = por %p1823_p1, %p1822_p0 }
  0x5f   : > { %p1818_p13 = pneg %p1817_p12 }
  0x61   : > { %p1825_p3 = pnand %p1824_p2, %p1818_p13 }
  0x8e   : > { %v269_v18 = vpop.permute.xlu0 %268 }
  0x90   : > { %v273_v19 = vpop.permute.xlu1 %272 }
  0x92   : > { %v271_v20 = vpop.permute.xlu0 %270 }
  0x93   : > { %v278_v22 = vsel %vm276_vm1, %v271_v20, %v273_v19  ;;  %v277_v23 = vsel %vm276_vm1, %v269_v18, %v271_v20  ;;  %v1600_v20 = vld [vmem:[%s2175_s1 + $0x14] sm:$0xf] }
  0x94   : > { %1582 = vmatprep.subr.msk.bf16.mxu0 %vm284_vm2, %v278_v22  ;;  %v275_v24 = vpop.permute.xlu1 %274  ;;  %v286_v25 = vsel %vm284_vm2, %v277_v23, 0 }
  0x95   : > { %295 = vmatpush1.bf16.msra.mxu0 %v286_v25  ;;  %v279_v26 = vsel %vm276_vm1, %v273_v19, %v275_v24 }
  0x96   : > { %v292_v28 = vsel %vm284_vm2, %v279_v26, 0  ;;  %1585 = vmatprep.subr.msk.bf16.mxu0 %vm284_vm2, %v391_v21  ;;  %v507_v30 = vpop.permute.xlu0 %506 }
  0x97   : > { %1643 = vmatpush3.bf16.msra.mxu1 %v292_v28 }
  0x98   : > { %1583 = vmatmul.mubr.msk.bf16.vlgmr.msra.gmra.mrb[0].mxu0 %vm280_vm3, %v1581_v27  ;;  %1648 = vmatprep.subr.bf16.mxu1 %v1880_v5  ;;  %v509_v32 = vpop.permute.xlu1 %508 }
  0x99   : > { %405 = vmatpush1.bf16.msra.mxu0 %v396_v29  ;;  %436 = vmatprep.mubr.bf16.mxu0 %v1881_v6  ;;  %v515_v37 = vsel %vm514_vm4, %v507_v30, %v509_v32  ;;  %v1604_v30 = vld [vmem:[%s2175_s1 + $0x18] sm:$0xf] }
  0x9a   : > { %1645 = vmatmul.mubr.msk.bf16.vlgmr.msra.gmra.mrb[0].mxu1 %vm280_vm3, %v1581_v27  ;;  %v511_v33 = vpop.permute.xlu0 %510  ;;  %v522_v41 = vsel %vm284_vm2, %v515_v37, 0  ;;  %v1608_v37 = vld [vmem:[%s2175_s1 + $0x1c] sm:$0xf] }
  0x9b   : > { %1649 = vmatpush3.bf16.msra.mxu1 %v402_v31  ;;  %v516_v34 = vsel %vm514_vm4, %v509_v32, %v511_v33  ;;  %1650 = vmatprep.mubr.msk.bf16.mxu1 %vm1882_vm0, %v1880_v5 }
  0x9c   : > { %v513_v35 = vpop.permute.xlu1 %512  ;;  %1589 = vmatprep.subr.msk.bf16.mxu0 %vm284_vm2, %v516_v34  ;;  %1654 = vmatprep.subr.bf16.mxu1 %v1880_v5 }
  0x9d   : > { %v517_v39 = vsel %vm514_vm4, %v511_v33, %v513_v35 }
  0x9e   : > { %v636_v36 = vpop.permute.xlu0 %635  ;;  %v528_v44 = vsel %vm284_vm2, %v517_v39, 0 }
  0xa0   : > { %v638_v38 = vpop.permute.xlu1 %637 }
  0xa1   : > { %v644_v47 = vsel %vm643_vm5, %v636_v36, %v638_v38 }
  0xa2   : > { %v640_v42 = vpop.permute.xlu0 %639  ;;  %v651_v52 = vsel %vm284_vm2, %v644_v47, 0 }
  0xa3   : > { %v645_v43 = vsel %vm643_vm5, %v638_v38, %v640_v42 }
  0xa4   : > { %1586 = vmatmul.mubr.msk.bf16.vlgmr.msra.gmra.mrb[0].mxu0 %vm280_vm3, %v245_v40  ;;  %v642_v46 = vpop.permute.xlu1 %641 }
  0xa5   : > { %531 = vmatpush1.bf16.msra.mxu0 %v522_v41  ;;  %562 = vmatprep.mubr.bf16.mxu0 %v1881_v6  ;;  %v646_v50 = vsel %vm643_vm5, %v640_v42, %v642_v46  ;;  %v1392_v41 = vsub.s32 0, %v1972_v3  ;;  %v1396_v42 = vsub.s32 1, %v1972_v3 }
  0xa6   : > { %1651 = vmatmul.mubr.msk.bf16.vlgmr.msra.gmra.mrb[0].mxu1 %vm280_vm3, %v245_v40  ;;  %1593 = vmatprep.subr.msk.bf16.mxu0 %vm284_vm2, %v645_v43  ;;  %v765_v45 = vpop.permute.xlu0 %764  ;;  %v657_v54 = vsel %vm284_vm2, %v646_v50, 0  ;;  %v1612_v40 = vld [vmem:[%s2175_s1 + $0x20] sm:$0xf]  ;;  %v1400_v43 = vsub.s32 2, %v1972_v3 }
  0xa7   : > { %1655 = vmatpush3.bf16.msra.mxu1 %v528_v44  ;;  %1656 = vmatprep.mubr.msk.bf16.mxu1 %vm1882_vm0, %v1880_v5 }
  0xa8   : > { %1660 = vmatprep.subr.bf16.mxu1 %v1880_v5  ;;  %v767_v48 = vpop.permute.xlu1 %766 }
  0xa9   : > { %v773_v57 = vsel %vm772_vm6, %v765_v45, %v767_v48 }
  0xaa   : > { %v769_v49 = vpop.permute.xlu0 %768  ;;  %v780_v62 = vsel %vm284_vm2, %v773_v57, 0 }
  0xab   : > { %v774_v53 = vsel %vm772_vm6, %v767_v48, %v769_v49 }
  0xac   : > { %v771_v56 = vpop.permute.xlu1 %770 }
  0xad   : > { %v775_v60 = vsel %vm772_vm6, %v769_v49, %v771_v56 }
  0xae   : > { %v894_v55 = vpop.permute.xlu0 %893  ;;  %v786_v0 = vsel %vm284_vm2, %v775_v60, 0 }
  0xb0   : > { %1590 = vmatmul.mubr.msk.bf16.vlgmr.msra.gmra.mrb[0].mxu0 %vm280_vm3, %v1588_v51  ;;  %v896_v58 = vpop.permute.xlu1 %895 }
  0xb1   : > { %660 = vmatpush1.bf16.msra.mxu0 %v651_v52  ;;  %691 = vmatprep.mubr.bf16.mxu0 %v1881_v6  ;;  %v902_v4 = vsel %vm901_vm7, %v894_v55, %v896_v58 }
  0xb2   : > { %1657 = vmatmul.mubr.msk.bf16.vlgmr.msra.gmra.mrb[0].mxu1 %vm280_vm3, %v1588_v51  ;;  %1597 = vmatprep.subr.msk.bf16.mxu0 %vm284_vm2, %v774_v53  ;;  %v898_v59 = vpop.permute.xlu0 %897  ;;  %v909_v11 = vsel %vm284_vm2, %v902_v4, 0 }
  0xb3   : > { %1661 = vmatpush3.bf16.msra.mxu1 %v657_v54  ;;  %1662 = vmatprep.mubr.msk.bf16.mxu1 %vm1882_vm0, %v1880_v5  ;;  %v903_v63 = vsel %vm901_vm7, %v896_v58, %v898_v59 }
  0xb4   : > { %1666 = vmatprep.subr.bf16.mxu1 %v1880_v5  ;;  %v900_v2 = vpop.permute.xlu1 %899 }
  0xb5   : > { %v904_v9 = vsel %vm901_vm7, %v898_v59, %v900_v2 }
  0xb6   : > { %v1023_v1 = vpop.permute.xlu0 %1022  ;;  %v915_v13 = vsel %vm284_vm2, %v904_v9, 0 }
  0xb8   : > { %v1025_v7 = vpop.permute.xlu1 %1024 }
  0xb9   : > { %v1031_v16 = vsel %vm1030_vm8, %v1023_v1, %v1025_v7 }
  0xba   : > { %v1027_v8 = vpop.permute.xlu0 %1026  ;;  %v1038_v21 = vsel %vm284_vm2, %v1031_v16, 0 }
  0xbb   : > { %v1032_v12 = vsel %vm1030_vm8, %v1025_v7, %v1027_v8 }
  0xbc   : > { %1594 = vmatmul.mubr.msk.bf16.vlgmr.msra.gmra.mrb[0].mxu0 %vm280_vm3, %v1592_v61  ;;  %v1029_v15 = vpop.permute.xlu1 %1028 }
  0xbd   : > { %789 = vmatpush1.bf16.msra.mxu0 %v780_v62  ;;  %820 = vmatprep.mubr.bf16.mxu0 %v1881_v6  ;;  %v1033_v19 = vsel %vm1030_vm8, %v1027_v8, %v1029_v15 }
  0xbe   : > { %1663 = vmatmul.mubr.msk.bf16.vlgmr.msra.gmra.mrb[0].mxu1 %vm280_vm3, %v1592_v61  ;;  %1601 = vmatprep.subr.msk.bf16.mxu0 %vm284_vm2, %v903_v63  ;;  %v1152_v14 = vpop.permute.xlu0 %1151  ;;  %v1044_v23 = vsel %vm284_vm2, %v1033_v19, 0 }
  0xbf   : > { %1667 = vmatpush3.bf16.msra.mxu1 %v786_v0  ;;  %1668 = vmatprep.mubr.msk.bf16.mxu1 %vm1882_vm0, %v1880_v5 }
  0xc0   : > { %1672 = vmatprep.subr.bf16.mxu1 %v1880_v5  ;;  %v1154_v17 = vpop.permute.xlu1 %1153 }
  0xc1   : > { %v1160_v26 = vsel %vm1159_vm9, %v1152_v14, %v1154_v17 }
  0xc2   : > { %v1156_v18 = vpop.permute.xlu0 %1155  ;;  %v1167_v31 = vsel %vm284_vm2, %v1160_v26, 0 }
  0xc3   : > { %v1161_v22 = vsel %vm1159_vm9, %v1154_v17, %v1156_v18 }
  0xc4   : > { %v1158_v25 = vpop.permute.xlu1 %1157 }
  0xc5   : > { %v1162_v29 = vsel %vm1159_vm9, %v1156_v18, %v1158_v25 }
  0xc6   : > { %v1281_v24 = vpop.permute.xlu0 %1280  ;;  %v1173_v33 = vsel %vm284_vm2, %v1162_v29, 0 }
  0xc8   : > { %1598 = vmatmul.mubr.msk.bf16.vlgmr.msra.gmra.mrb[0].mxu0 %vm280_vm3, %v1596_v10  ;;  %v1283_v27 = vpop.permute.xlu1 %1282 }
  0xc9   : > { %918 = vmatpush1.bf16.msra.mxu0 %v909_v11  ;;  %949 = vmatprep.mubr.bf16.mxu0 %v1881_v6  ;;  %v1289_v35 = vsel %vm1288_vm10, %v1281_v24, %v1283_v27 }
  0xca   : > { %1669 = vmatmul.mubr.msk.bf16.vlgmr.msra.gmra.mrb[0].mxu1 %vm280_vm3, %v1596_v10  ;;  %1605 = vmatprep.subr.msk.bf16.mxu0 %vm284_vm2, %v1032_v12  ;;  %v1285_v28 = vpop.permute.xlu0 %1284  ;;  %v1296_v38 = vsel %vm284_vm2, %v1289_v35, 0 }
  0xcb   : > { %1673 = vmatpush3.bf16.msra.mxu1 %v915_v13  ;;  %1674 = vmatprep.mubr.msk.bf16.mxu1 %vm1882_vm0, %v1880_v5  ;;  %v1290_v32 = vsel %vm1288_vm10, %v1283_v27, %v1285_v28 }
  0xcc   : > { %1678 = vmatprep.subr.bf16.mxu1 %v1880_v5  ;;  %v1287_v34 = vpop.permute.xlu1 %1286 }
  0xcd   : > { %v1291_v36 = vsel %vm1288_vm10, %v1285_v28, %v1287_v34 }
  0xce   : > { %v1302_v39 = vsel %vm284_vm2, %v1291_v36, 0 }
  0xd4   : > { %1602 = vmatmul.mubr.msk.bf16.vlgmr.msra.gmra.mrb[0].mxu0 %vm280_vm3, %v1600_v20 }
  0xd5   : > { %1047 = vmatpush1.bf16.msra.mxu0 %v1038_v21  ;;  %1078 = vmatprep.mubr.bf16.mxu0 %v1881_v6 }
  0xd6   : > { %1675 = vmatmul.mubr.msk.bf16.vlgmr.msra.gmra.mrb[0].mxu1 %vm280_vm3, %v1600_v20  ;;  %1609 = vmatprep.subr.msk.bf16.mxu0 %vm284_vm2, %v1161_v22 }
  0xd7   : > { %1679 = vmatpush3.bf16.msra.mxu1 %v1044_v23  ;;  %1680 = vmatprep.mubr.msk.bf16.mxu1 %vm1882_vm0, %v1880_v5 }
  0xd8   : > { %1684 = vmatprep.subr.bf16.mxu1 %v1880_v5 }
  0xe0   : > { %1606 = vmatmul.mubr.msk.bf16.vlgmr.msra.gmra.mrb[0].mxu0 %vm280_vm3, %v1604_v30 }
  0xe1   : > { %1176 = vmatpush1.bf16.msra.mxu0 %v1167_v31  ;;  %1207 = vmatprep.mubr.bf16.mxu0 %v1881_v6 }
  0xe2   : > { %1681 = vmatmul.mubr.msk.bf16.vlgmr.msra.gmra.mrb[0].mxu1 %vm280_vm3, %v1604_v30  ;;  %1613 = vmatprep.subr.msk.bf16.mxu0 %vm284_vm2, %v1290_v32 }
  0xe3   : > { %1685 = vmatpush3.bf16.msra.mxu1 %v1173_v33  ;;  %1686 = vmatprep.mubr.msk.bf16.mxu1 %vm1882_vm0, %v1880_v5 }
  0xe4   : > { %1690 = vmatprep.subr.bf16.mxu1 %v1880_v5 }
  0xec   : > { %1610 = vmatmul.mubr.msk.bf16.vlgmr.msra.gmra.mrb[0].mxu0 %vm280_vm3, %v1608_v37 }
  0xed   : > { %1305 = vmatpush1.bf16.msra.mxu0 %v1296_v38  ;;  %1336 = vmatprep.mubr.bf16.mxu0 %v1881_v6  ;;  %v1388_v6 = vld [vmem:[%s2176_s2] sm:$0x7] }
  0xee   : > { %1687 = vmatmul.mubr.msk.bf16.vlgmr.msra.gmra.mrb[0].mxu1 %vm280_vm3, %v1608_v37  ;;  %v1397_v44 = vrot.slane %v1388_v6, %v1396_v42  ;;  %v1401_v45 = vrot.slane %v1388_v6, %v1400_v43 }
  0xef   : > { %1691 = vmatpush3.bf16.msra.mxu1 %v1302_v39  ;;  %1692 = vmatprep.mubr.msk.bf16.mxu1 %vm1882_vm0, %v1880_v5  ;;  %v1393_v5 = vrot.slane %v1388_v6, %v1392_v41 }
  0xf8   : > { %1614 = vmatmul.mubr.msk.bf16.vlgmr.msra.gmra.mrb[0].mxu0 %vm280_vm3, %v1612_v40 }
  0xfa   : > { %1693 = vmatmul.mubr.msk.bf16.vlgmr.msra.gmra.mrb[0].mxu1 %vm280_vm3, %v1612_v40 }
 0x1cb   : > { %v1338_v46 = vpop.f32.mrb[0].mxu0 }
 0x1cc   : > { %v1405_v47 = vmul.f32 %v1393_v5, %v1338_v46  ;;  %v1340_v48 = vpop.f32.mrb[1].mxu0 }
 0x1cd   : > { %v1406_v49 = vmul.f32 %v1397_v44, %v1340_v48  ;;  %v1342_v50 = vpop.f32.mrb[2].mxu0  ;;  %v1379_v51 = vpop.f32.mrb[0].mxu1 }
 0x1ce   : > { %v1429_v52 = vmul.f32 %v1405_v47, %v1405_v47  ;;  %v1407_v53 = vmul.f32 %v1401_v45, %v1379_v51  ;;  %v1343_v54 = vpop.f32.mrb[3].mxu0  ;;  %v1694_v55 = vpop.f32.mrb[1].mxu1 }
 0x1cf   : > { %v1622_v56 = vpack.c.bf16 %v1406_v49, %v1405_v47  ;;  %v1430_v57 = vmul.f32 %v1406_v49, %v1406_v49  ;;  %v1382_v3 = vpop.f32.mrb[2].mxu1  ;;  %v1423_v58 = vadd.f32 %v1406_v49, %v1405_v47 }
 0x1d0   : > { %v1623_v59 = vpack.c.bf16 %v1407_v53, %v1407_v53  ;;  %v1695_v60 = vpop.f32.mrb[3].mxu1  ;;  %v1431_v61 = vmul.f32 %v1407_v53, %v1407_v53 }
 0x1d1   : > { %v1424_v62 = vadd.f32 %v1423_v58, %v1407_v53  ;;  %v1432_v63 = vadd.f32 %v1430_v57, %v1429_v52  ;;  %1421 = vst [vmem:[%s218_s10] sm:$0xff] %v1622_v56 }
 0x1d2   : > { %1422 = vst [vmem:[%s218_s10 + $0x8] sm:$0xf] %v1623_v59 }
 0x1d3   : > { %1425 = vadd.xlane.f32.xlu0 %v1424_v62  ;;  %v1433_v0 = vadd.f32 %v1432_v63, %v1431_v61 }
 0x1d5   : > { %1434 = vadd.xlane.f32.xlu1 %v1433_v0 }
 0x1d6   : > { %1828 = shalt.err (!%p1825_p3)
}
 0x1d7   : > { %s1829_s22 = scalar_lea.hbm %s2128_s15, 192  ;;  %s1833_s8 = scalar_lea.hbm %s2177_s3, 384 }
 0x1d8   : > { %p1830_p4 = scmp.ne.s32.totalorder %s2128_s15, %s1829_s22  ;;  %p1834_p9 = scmp.lt.u32.totalorder %s2128_s15, %s2177_s3 }
 0x1d9   : > { %p1835_p10 = scmp.lt.u32.totalorder %s1833_s8, %s1829_s22  ;;  %p1837_p12 = scmp.lt.u32.totalorder %s1829_s22, %s2128_s15 }
 0x1da   : > { %p1831_p7 = pnand %p1830_p4, %p1960_p5 }
 0x1db   : > { %p1836_p11 = por %p1835_p10, %p1834_p9 }
 0x1dc   : > { %p1832_p8 = pneg %p1831_p7 }
 0x1dd   : > { %p1838_p13 = por %p1837_p12, %p1836_p11 }
 0x1df   : > { %p1839_p0 = pnand %p1838_p13, %p1832_p8 }
 0x1e1   : > { %1842 = shalt.err (!%p1839_p0)
}
 0x1e2   : > { %1762 = dma.vmem_to_hbm [thread:$0]  (%p1960_p5), %s1461_s12, 192, %s2128_s15, %s1438_s16   ;;  %vm1427_vm11 = vcmask 7168  }
 0x1e3   : > { %s239_s14 = scalar_lea.vmem %s2178_s4, %s1976_s6  ;;  %s243_s25 = scalar_lea.vmem %s2179_s5, %s1976_s6 }
 0x260   : > { %v1426_v1 = vpop.xlane.xlu0 %1425 }
 0x261   : > { %1428 = vst.msk [vmem:[%s239_s14] sm:$0xff] %vm1427_vm11, %v1426_v1 }
 0x262   : > { %v1435_v2 = vpop.xlane.xlu1 %1434 }
 0x263   : > { %1436 = vst.msk [vmem:[%s243_s25] sm:$0xff] %vm1427_vm11, %v1435_v2 }
 0x264 PF: > { %p1768_p1 = scmp.ge.s32.totalorder %s1877_s21, 2  ;;  %s1478_s28 = sand.u32 1, %s1865_s18  }
 0x265   : > { %s1479_s12 = scalar_lea.sflag [#allocation3], %s1478_s28 }
 0x266   : > { %p1765_p5 = pnand %p1768_p1, %p1964_p6 }
 0x268   : > { %1860 = dma.done.wait (!%p1765_p5), %s1479_s12, 192  }
 0x269   : > { %1862 = vsyncadd (!%p1765_p5), %s1479_s12, 4294967104  ;;  %p16_p2 = scmp.ge.s32.totalorder %s1947_s24, 4   ;;  %s2182_s18 = smov %s1869_s19 }
 0x26a   : > { %s2183_s19 = smov %s1873_s20  ;;  %s2184_s20 = smov %s1958_s27 }
 0x26b   : > { %s2185_s21 = smov %s1947_s24  ;;  %18 = sbr.rel (!%p16_p2) target bundleno = 3 (0x3), region = 99 }
 0x272   :  { %1498 = vsyncpa [#allocation3], 1 }
 0x273   :  { %1500 = vsyncpa [#allocation3 + $0x1], 1 }

</bundles_post_ra>
